<compile_context>
chip_gen: v5e
topology: v5e:2x2
jax: 0.10.0
libtpu: 0.0.40
codegen_flags: <defaults>
</compile_context>

<pallas_src>
import math
import functools

import jax
import jax.numpy as jnp
from jax.experimental import pallas as pl
from jax.experimental.pallas import tpu as pltpu

LAYER_NORM_EPS = 1e-12


def _round_up(x, m):
    return ((x + m - 1) // m) * m


def _transform_kernel(x_ref, w_ref, b_ref, gamma_ref, beta_ref, out_ref, *,
                      eps, mxu_dtype):
    # MXU operands in mxu_dtype (bf16 by default); f32 accumulation.
    x = x_ref[...].astype(mxu_dtype)
    # Weight is already (in_features, out_features) = [K, N] — plain x @ W,
    # no transposed-RHS contraction, no XLU transpose of the resident block.
    h = jax.lax.dot_general(
        x, w_ref[...],
        dimension_numbers=(((1,), (0,)), ((), ())),
        preferred_element_type=jnp.float32)
    h = h + b_ref[...].astype(jnp.float32)
    # erf-GELU (f32 epilogue; matches the module's torch.erf gelu).
    h = h * 0.5 * (1.0 + jax.lax.erf(h * (1.0 / math.sqrt(2.0))))
    # LayerNorm over the hidden dim (biased variance), f32 statistics.
    mu = jnp.mean(h, axis=-1, keepdims=True)
    var = jnp.mean(jnp.square(h - mu), axis=-1, keepdims=True)
    h = (h - mu) * jax.lax.rsqrt(var + eps)
    h = h * gamma_ref[...].astype(jnp.float32) + beta_ref[...].astype(jnp.float32)
    out_ref[...] = h.astype(out_ref.dtype)


def bert_prediction_head_transform(hidden_states, params, *, tm=1024,
                                   mxu_dtype=jnp.bfloat16,
                                   eps=LAYER_NORM_EPS,
                                   vmem_limit_bytes=48 * 1024 * 1024):
    """hidden_states: (B, S, H). Returns LayerNorm(gelu(dense(x))), shape (B, S, H)."""
    B, S, H = hidden_states.shape
    w_dense = params["dense_w"]   # (H, H)  PyTorch (out_features, in_features)
    b_dense = params["dense_b"]   # (H,)
    gamma = params["ln_gamma"]    # (H,)
    beta = params["ln_beta"]      # (H,)

    out_dtype = hidden_states.dtype
    M = B * S
    x2d = hidden_states.reshape(M, H)

    if mxu_dtype is None:
        mxu_dtype = x2d.dtype
    # One-time wrapper transpose + cast: weight streamed to VMEM as [K, N] at the
    # MXU dtype (single cheap HBM copy amortized over the whole grid).
    w_kn = w_dense.T.astype(mxu_dtype)

    # M-tile selection.  tm is a multiple of 128; ragged last block is handled by
    # Pallas (no wrapper pad/slice copies).  If the whole problem fits in one tile,
    # split it in two so v7x's two TensorCores both get work.
    if M <= tm:
        tm_eff = _round_up(pl.cdiv(M, 2), 8) if M >= 16 else M
    else:
        tm_eff = tm
    grid = (pl.cdiv(M, tm_eff),)

    b2d = b_dense.reshape(1, H)
    g2d = gamma.reshape(1, H)
    be2d = beta.reshape(1, H)

    x_bytes = M * H * jnp.dtype(x2d.dtype).itemsize
    out_bytes = M * H * jnp.dtype(out_dtype).itemsize
    w_bytes = H * H * jnp.dtype(w_kn.dtype).itemsize
    cost = pl.CostEstimate(
        flops=2 * M * H * H + 10 * M * H,
        transcendentals=M * H,
        bytes_accessed=x_bytes + out_bytes + w_bytes + 4 * 4 * H,
    )

    def build(inv_pipeline_mode):
        extra = {} if inv_pipeline_mode is None else {"pipeline_mode": inv_pipeline_mode}

        def inv_spec(shape):
            # Grid-invariant operand: constant index map; single-buffered when
            # pipeline_mode=pl.Buffered(1) is accepted.
            return pl.BlockSpec(shape, lambda m: (0,) * len(shape), **extra)

        return pl.pallas_call(
            functools.partial(_transform_kernel, eps=eps, mxu_dtype=mxu_dtype),
            out_shape=jax.ShapeDtypeStruct((M, H), out_dtype),
            grid_spec=pltpu.PrefetchScalarGridSpec(
                num_scalar_prefetch=0,
                grid=grid,
                in_specs=[
                    pl.BlockSpec((tm_eff, H), lambda m: (m, 0)),  # activations
                    inv_spec((H, H)),                              # weight [K, N]
                    inv_spec((1, H)),                              # dense bias
                    inv_spec((1, H)),                              # LN gamma
                    inv_spec((1, H)),                              # LN beta
                ],
                out_specs=pl.BlockSpec((tm_eff, H), lambda m: (m, 0)),
            ),
            compiler_params=pltpu.CompilerParams(
                dimension_semantics=("parallel",),
                vmem_limit_bytes=vmem_limit_bytes),
            cost_estimate=cost,
        )

    try:
        out = build(pl.Buffered(1))(x2d, w_kn, b2d, g2d, be2d)
    except Exception:
        # pipeline_mode=pl.Buffered(1) not supported for pallas_call pipelines on
        # this jax version: fall back to default (double) buffering of the small
        # invariant operands.  Results are identical either way.
        out = build(None)(x2d, w_kn, b2d, g2d, be2d)

    return out.reshape(B, S, H)


def _reference(hidden_states, params, eps=LAYER_NORM_EPS, mxu_dtype=None):
    x = hidden_states
    w = params["dense_w"]
    if mxu_dtype is not None:
        x = x.astype(mxu_dtype)
        w = w.astype(mxu_dtype)
    h = jax.lax.dot_general(
        x, w,
        dimension_numbers=(((x.ndim - 1,), (1,)), ((), ())),
        preferred_element_type=jnp.float32)
    h = h + params["dense_b"]
    h = h * 0.5 * (1.0 + jax.lax.erf(h / math.sqrt(2.0)))
    mu = jnp.mean(h, axis=-1, keepdims=True)
    var = jnp.mean(jnp.square(h - mu), axis=-1, keepdims=True)
    h = (h - mu) / jnp.sqrt(var + eps)
    return h * params["ln_gamma"] + params["ln_beta"]


if __name__ == "__main__":
    # Small, BERT-consistent shapes: batch=2, seq=8, hidden=32.
    B, S, H = 2, 8, 32

    key = jax.random.PRNGKey(0)
    k_x, k_wd, k_bd, k_g, k_b = jax.random.split(key, 5)

    hidden_states = jax.random.normal(k_x, (B, S, H), dtype=jnp.float32)

    params = {
        # nn.Linear(H, H): weight stored (out_features, in_features)
        "dense_w": jax.random.normal(k_wd, (H, H), dtype=jnp.float32) * 0.02,
        "dense_b": jax.random.normal(k_bd, (H,), dtype=jnp.float32) * 0.02,
        # LayerNorm affine perturbed away from identity so it is exercised.
        "ln_gamma": 1.0 + 0.1 * jax.random.normal(k_g, (H,), dtype=jnp.float32),
        "ln_beta": 0.1 * jax.random.normal(k_b, (H,), dtype=jnp.float32),
    }

    # Default path: bf16 MXU operands, f32 accumulation + epilogue.
    out = jax.block_until_ready(bert_prediction_head_transform(hidden_states, params))
    assert out.shape == (B, S, H)
    ref_bf16 = _reference(hidden_states, params, mxu_dtype=jnp.bfloat16)
    ref_f32 = _reference(hidden_states, params)
    assert jnp.allclose(out, ref_bf16, atol=2e-3, rtol=2e-3), "mismatch vs bf16-matmul reference"
    assert jnp.allclose(out, ref_f32, atol=3e-2, rtol=3e-2), "mismatch vs f32 reference"

    # f32 MXU path: tight match against the f32 reference (validates exact math).
    out_f32 = jax.block_until_ready(
        bert_prediction_head_transform(hidden_states, params, mxu_dtype=jnp.float32))
    assert jnp.allclose(out_f32, ref_f32, atol=1e-4, rtol=1e-4), "mismatch (f32 path)"

    # Ragged path: batch*seq not a multiple of 8 / the M tile (no wrapper pad).
    hs2 = jax.random.normal(jax.random.PRNGKey(1), (3, 5, H), dtype=jnp.float32)
    out2 = jax.block_until_ready(bert_prediction_head_transform(hs2, params))
    ref2 = _reference(hs2, params, mxu_dtype=jnp.bfloat16)
    assert out2.shape == (3, 5, H)
    assert jnp.allclose(out2, ref2, atol=2e-3, rtol=2e-3), "mismatch (ragged path)"

    print("KERNEL_OK")
</pallas_src>

<mosaic_0001>
module attributes {stable_mosaic.version = 11 : i64} {
  func.func @_transform_kernel(%arg0: i32, %arg1: memref<8x32xf32, #tpu.memory_space<vmem>>, %arg2: memref<32x32xbf16, #tpu.memory_space<vmem>>, %arg3: memref<1x32xf32, #tpu.memory_space<vmem>>, %arg4: memref<1x32xf32, #tpu.memory_space<vmem>>, %arg5: memref<1x32xf32, #tpu.memory_space<vmem>>, %arg6: memref<8x32xf32, #tpu.memory_space<vmem>>) attributes {dimension_semantics = [#tpu.dimension_semantics<parallel>], iteration_bounds = array<i64: 2>, scalar_prefetch = 0 : i64, scratch_operands = 0 : i64, tpu.core_type = #tpu.core_type<tc>, window_params = [{transform_indices = @transform_0, window_bounds = array<i64: 8, 32>}, {pipeline_mode = #tpu.pipeline_mode<synchronous>, transform_indices = @transform_1, window_bounds = array<i64: 32, 32>}, {pipeline_mode = #tpu.pipeline_mode<synchronous>, transform_indices = @transform_2, window_bounds = array<i64: 1, 32>}, {pipeline_mode = #tpu.pipeline_mode<synchronous>, transform_indices = @transform_3, window_bounds = array<i64: 1, 32>}, {pipeline_mode = #tpu.pipeline_mode<synchronous>, transform_indices = @transform_4, window_bounds = array<i64: 1, 32>}, {transform_indices = @transform_5, window_bounds = array<i64: 8, 32>}]} {
    %c0 = arith.constant 0 : index
    %c0_0 = arith.constant 0 : index
    %0 = vector.load %arg1[%c0, %c0_0] : memref<8x32xf32, #tpu.memory_space<vmem>>, vector<8x32xf32>
    %1 = arith.truncf %0 : vector<8x32xf32> to vector<8x32xbf16>
    %c0_1 = arith.constant 0 : index
    %c0_2 = arith.constant 0 : index
    %2 = vector.load %arg2[%c0_1, %c0_2] : memref<32x32xbf16, #tpu.memory_space<vmem>>, vector<32x32xbf16>
    %cst = arith.constant dense<0.000000e+00> : vector<8x32xf32>
    %3 = tpu.matmul %1, %2, %cst {dimension_numbers = #tpu.dot_dimension_numbers<[1], [0], [0], [1], [0, 0, 1, 1], [], []>} : vector<8x32xbf16>, vector<32x32xbf16>, vector<8x32xf32> -> vector<8x32xf32>
    %c0_3 = arith.constant 0 : index
    %c0_4 = arith.constant 0 : index
    %4 = vector.load %arg3[%c0_3, %c0_4] : memref<1x32xf32, #tpu.memory_space<vmem>>, vector<1x32xf32>
    %5 = vector.broadcast %4 : vector<1x32xf32> to vector<8x32xf32>
    %6 = arith.addf %3, %5 : vector<8x32xf32>
    %cst_5 = arith.constant 5.000000e-01 : f32
    %7 = vector.broadcast %cst_5 : f32 to vector<8x32xf32>
    %8 = arith.mulf %6, %7 : vector<8x32xf32>
    %cst_6 = arith.constant 0.707106769 : f32
    %9 = vector.broadcast %cst_6 : f32 to vector<8x32xf32>
    %10 = arith.mulf %6, %9 : vector<8x32xf32>
    %11 = math.erf %10 : vector<8x32xf32>
    %cst_7 = arith.constant 1.000000e+00 : f32
    %12 = vector.broadcast %cst_7 : f32 to vector<8x32xf32>
    %13 = arith.addf %12, %11 : vector<8x32xf32>
    %14 = arith.mulf %8, %13 : vector<8x32xf32>
    %cst_8 = arith.constant dense<0.000000e+00> : vector<8xf32>
    %15 = vector.multi_reduction <add>, %14, %cst_8 [1] : vector<8x32xf32> to vector<8xf32>
    %16 = vector.shape_cast %15 : vector<8xf32> to vector<8x1xf32>
    %cst_9 = arith.constant 3.200000e+01 : f32
    %17 = vector.broadcast %cst_9 : f32 to vector<8x1xf32>
    %18 = arith.divf %16, %17 : vector<8x1xf32>
    %19 = vector.broadcast %18 : vector<8x1xf32> to vector<8x32xf32>
    %20 = arith.subf %14, %19 : vector<8x32xf32>
    %21 = arith.mulf %20, %20 : vector<8x32xf32>
    %cst_10 = arith.constant dense<0.000000e+00> : vector<8xf32>
    %22 = vector.multi_reduction <add>, %21, %cst_10 [1] : vector<8x32xf32> to vector<8xf32>
    %23 = vector.shape_cast %22 : vector<8xf32> to vector<8x1xf32>
    %cst_11 = arith.constant 3.200000e+01 : f32
    %24 = vector.broadcast %cst_11 : f32 to vector<8x1xf32>
    %25 = arith.divf %23, %24 : vector<8x1xf32>
    %26 = vector.broadcast %18 : vector<8x1xf32> to vector<8x32xf32>
    %27 = arith.subf %14, %26 : vector<8x32xf32>
    %cst_12 = arith.constant 9.99999996E-13 : f32
    %28 = vector.broadcast %cst_12 : f32 to vector<8x1xf32>
    %29 = arith.addf %25, %28 : vector<8x1xf32>
    %30 = math.rsqrt %29 : vector<8x1xf32>
    %31 = vector.broadcast %30 : vector<8x1xf32> to vector<8x32xf32>
    %32 = arith.mulf %27, %31 : vector<8x32xf32>
    %c0_13 = arith.constant 0 : index
    %c0_14 = arith.constant 0 : index
    %33 = vector.load %arg4[%c0_13, %c0_14] : memref<1x32xf32, #tpu.memory_space<vmem>>, vector<1x32xf32>
    %34 = vector.broadcast %33 : vector<1x32xf32> to vector<8x32xf32>
    %35 = arith.mulf %32, %34 : vector<8x32xf32>
    %c0_15 = arith.constant 0 : index
    %c0_16 = arith.constant 0 : index
    %36 = vector.load %arg5[%c0_15, %c0_16] : memref<1x32xf32, #tpu.memory_space<vmem>>, vector<1x32xf32>
    %37 = vector.broadcast %36 : vector<1x32xf32> to vector<8x32xf32>
    %38 = arith.addf %35, %37 : vector<8x32xf32>
    %c0_17 = arith.constant 0 : index
    %c0_18 = arith.constant 0 : index
    %39 = vector.load %arg6[%c0_17, %c0_18] : memref<8x32xf32, #tpu.memory_space<vmem>>, vector<8x32xf32>
    tpu.vector_store %arg6[%c0_17, %c0_18], %38 {strides = array<i32>} : memref<8x32xf32, #tpu.memory_space<vmem>>, vector<8x32xf32>,
    return
  }
  func.func @transform_0(%arg0: i32) -> (i32, i32) {
    %c0_i32 = arith.constant 0 : i32
    %c0_i32_0 = arith.constant 0 : i32
    return %arg0, %c0_i32 : i32, i32
  }
  func.func @transform_1(%arg0: i32) -> (i32, i32) {
    %c0_i32 = arith.constant 0 : i32
    %c0_i32_0 = arith.constant 0 : i32
    %c0_i32_1 = arith.constant 0 : i32
    return %c0_i32, %c0_i32_0 : i32, i32
  }
  func.func @transform_2(%arg0: i32) -> (i32, i32) {
    %c0_i32 = arith.constant 0 : i32
    %c0_i32_0 = arith.constant 0 : i32
    %c0_i32_1 = arith.constant 0 : i32
    return %c0_i32, %c0_i32_0 : i32, i32
  }
  func.func @transform_3(%arg0: i32) -> (i32, i32) {
    %c0_i32 = arith.constant 0 : i32
    %c0_i32_0 = arith.constant 0 : i32
    %c0_i32_1 = arith.constant 0 : i32
    return %c0_i32, %c0_i32_0 : i32, i32
  }
  func.func @transform_4(%arg0: i32) -> (i32, i32) {
    %c0_i32 = arith.constant 0 : i32
    %c0_i32_0 = arith.constant 0 : i32
    %c0_i32_1 = arith.constant 0 : i32
    return %c0_i32, %c0_i32_0 : i32, i32
  }
  func.func @transform_5(%arg0: i32) -> (i32, i32) {
    %c0_i32 = arith.constant 0 : i32
    %c0_i32_0 = arith.constant 0 : i32
    return %arg0, %c0_i32 : i32, i32
  }
}

module attributes {stable_mosaic.version = 11 : i64} {
  func.func @_transform_kernel(%arg0: i32, %arg1: memref<8x32xf32, #tpu.memory_space<vmem>>, %arg2: memref<32x32xbf16, #tpu.memory_space<vmem>>, %arg3: memref<1x32xf32, #tpu.memory_space<vmem>>, %arg4: memref<1x32xf32, #tpu.memory_space<vmem>>, %arg5: memref<1x32xf32, #tpu.memory_space<vmem>>, %arg6: memref<8x32xf32, #tpu.memory_space<vmem>>) attributes {dimension_semantics = [#tpu.dimension_semantics<parallel>], iteration_bounds = array<i64: 2>, scalar_prefetch = 0 : i64, scratch_operands = 0 : i64, tpu.core_type = #tpu.core_type<tc>, window_params = [{transform_indices = @transform_0, window_bounds = array<i64: 8, 32>}, {pipeline_mode = #tpu.pipeline_mode<synchronous>, transform_indices = @transform_1, window_bounds = array<i64: 32, 32>}, {pipeline_mode = #tpu.pipeline_mode<synchronous>, transform_indices = @transform_2, window_bounds = array<i64: 1, 32>}, {pipeline_mode = #tpu.pipeline_mode<synchronous>, transform_indices = @transform_3, window_bounds = array<i64: 1, 32>}, {pipeline_mode = #tpu.pipeline_mode<synchronous>, transform_indices = @transform_4, window_bounds = array<i64: 1, 32>}, {transform_indices = @transform_5, window_bounds = array<i64: 8, 32>}]} {
    %c0 = arith.constant 0 : index
    %c0_0 = arith.constant 0 : index
    %0 = vector.load %arg1[%c0, %c0_0] : memref<8x32xf32, #tpu.memory_space<vmem>>, vector<8x32xf32>
    %1 = arith.truncf %0 : vector<8x32xf32> to vector<8x32xbf16>
    %c0_1 = arith.constant 0 : index
    %c0_2 = arith.constant 0 : index
    %2 = vector.load %arg2[%c0_1, %c0_2] : memref<32x32xbf16, #tpu.memory_space<vmem>>, vector<32x32xbf16>
    %cst = arith.constant dense<0.000000e+00> : vector<8x32xf32>
    %3 = tpu.matmul %1, %2, %cst {dimension_numbers = #tpu.dot_dimension_numbers<[1], [0], [0], [1], [0, 0, 1, 1], [], []>} : vector<8x32xbf16>, vector<32x32xbf16>, vector<8x32xf32> -> vector<8x32xf32>
    %c0_3 = arith.constant 0 : index
    %c0_4 = arith.constant 0 : index
    %4 = vector.load %arg3[%c0_3, %c0_4] : memref<1x32xf32, #tpu.memory_space<vmem>>, vector<1x32xf32>
    %5 = vector.broadcast %4 : vector<1x32xf32> to vector<8x32xf32>
    %6 = arith.addf %3, %5 : vector<8x32xf32>
    %cst_5 = arith.constant 5.000000e-01 : f32
    %7 = vector.broadcast %cst_5 : f32 to vector<8x32xf32>
    %8 = arith.mulf %6, %7 : vector<8x32xf32>
    %cst_6 = arith.constant 0.707106769 : f32
    %9 = vector.broadcast %cst_6 : f32 to vector<8x32xf32>
    %10 = arith.mulf %6, %9 : vector<8x32xf32>
    %11 = math.erf %10 : vector<8x32xf32>
    %cst_7 = arith.constant 1.000000e+00 : f32
    %12 = vector.broadcast %cst_7 : f32 to vector<8x32xf32>
    %13 = arith.addf %12, %11 : vector<8x32xf32>
    %14 = arith.mulf %8, %13 : vector<8x32xf32>
    %cst_8 = arith.constant dense<0.000000e+00> : vector<8xf32>
    %15 = vector.multi_reduction <add>, %14, %cst_8 [1] : vector<8x32xf32> to vector<8xf32>
    %16 = vector.shape_cast %15 : vector<8xf32> to vector<8x1xf32>
    %cst_9 = arith.constant 3.200000e+01 : f32
    %17 = vector.broadcast %cst_9 : f32 to vector<8x1xf32>
    %18 = arith.divf %16, %17 : vector<8x1xf32>
    %19 = vector.broadcast %18 : vector<8x1xf32> to vector<8x32xf32>
    %20 = arith.subf %14, %19 : vector<8x32xf32>
    %21 = arith.mulf %20, %20 : vector<8x32xf32>
    %cst_10 = arith.constant dense<0.000000e+00> : vector<8xf32>
    %22 = vector.multi_reduction <add>, %21, %cst_10 [1] : vector<8x32xf32> to vector<8xf32>
    %23 = vector.shape_cast %22 : vector<8xf32> to vector<8x1xf32>
    %cst_11 = arith.constant 3.200000e+01 : f32
    %24 = vector.broadcast %cst_11 : f32 to vector<8x1xf32>
    %25 = arith.divf %23, %24 : vector<8x1xf32>
    %26 = vector.broadcast %18 : vector<8x1xf32> to vector<8x32xf32>
    %27 = arith.subf %14, %26 : vector<8x32xf32>
    %cst_12 = arith.constant 9.99999996E-13 : f32
    %28 = vector.broadcast %cst_12 : f32 to vector<8x1xf32>
    %29 = arith.addf %25, %28 : vector<8x1xf32>
    %30 = math.rsqrt %29 : vector<8x1xf32>
    %31 = vector.broadcast %30 : vector<8x1xf32> to vector<8x32xf32>
    %32 = arith.mulf %27, %31 : vector<8x32xf32>
    %c0_13 = arith.constant 0 : index
    %c0_14 = arith.constant 0 : index
    %33 = vector.load %arg4[%c0_13, %c0_14] : memref<1x32xf32, #tpu.memory_space<vmem>>, vector<1x32xf32>
    %34 = vector.broadcast %33 : vector<1x32xf32> to vector<8x32xf32>
    %35 = arith.mulf %32, %34 : vector<8x32xf32>
    %c0_15 = arith.constant 0 : index
    %c0_16 = arith.constant 0 : index
    %36 = vector.load %arg5[%c0_15, %c0_16] : memref<1x32xf32, #tpu.memory_space<vmem>>, vector<1x32xf32>
    %37 = vector.broadcast %36 : vector<1x32xf32> to vector<8x32xf32>
    %38 = arith.addf %35, %37 : vector<8x32xf32>
    %c0_17 = arith.constant 0 : index
    %c0_18 = arith.constant 0 : index
    %39 = vector.load %arg6[%c0_17, %c0_18] : memref<8x32xf32, #tpu.memory_space<vmem>>, vector<8x32xf32>
    tpu.vector_store %arg6[%c0_17, %c0_18], %38 {strides = array<i32>} : memref<8x32xf32, #tpu.memory_space<vmem>>, vector<8x32xf32>,
    return
  }
  func.func @transform_0(%arg0: i32) -> (i32, i32) {
    %c0_i32 = arith.constant 0 : i32
    %c0_i32_0 = arith.constant 0 : i32
    return %arg0, %c0_i32 : i32, i32
  }
  func.func @transform_1(%arg0: i32) -> (i32, i32) {
    %c0_i32 = arith.constant 0 : i32
    %c0_i32_0 = arith.constant 0 : i32
    %c0_i32_1 = arith.constant 0 : i32
    return %c0_i32, %c0_i32_0 : i32, i32
  }
  func.func @transform_2(%arg0: i32) -> (i32, i32) {
    %c0_i32 = arith.constant 0 : i32
    %c0_i32_0 = arith.constant 0 : i32
    %c0_i32_1 = arith.constant 0 : i32
    return %c0_i32, %c0_i32_0 : i32, i32
  }
  func.func @transform_3(%arg0: i32) -> (i32, i32) {
    %c0_i32 = arith.constant 0 : i32
    %c0_i32_0 = arith.constant 0 : i32
    %c0_i32_1 = arith.constant 0 : i32
    return %c0_i32, %c0_i32_0 : i32, i32
  }
  func.func @transform_4(%arg0: i32) -> (i32, i32) {
    %c0_i32 = arith.constant 0 : i32
    %c0_i32_0 = arith.constant 0 : i32
    %c0_i32_1 = arith.constant 0 : i32
    return %c0_i32, %c0_i32_0 : i32, i32
  }
  func.func @transform_5(%arg0: i32) -> (i32, i32) {
    %c0_i32 = arith.constant 0 : i32
    %c0_i32_0 = arith.constant 0 : i32
    return %arg0, %c0_i32 : i32, i32
  }
}

</mosaic_0001>

<bundles_post_ra>
// kernel: tpu_custom_call.1
= control target key start
LH: loop header
LB: loop body
LE: loop exit
PB: predicated region body
PF: predicated region fallthrough
CT: control target
= control target key end

     0   :  { %10 = vsyncpa [#allocation3], 0  ;;  %s893_s0 = inlined_call_operand.hbm [shape: f32[16,32], index: 0, kind: input, shape index: {}]   ;;  %s894_s1 = inlined_call_operand.hbm [shape: bf16[32,32], index: 1, kind: input, shape index: {}]   ;;  %s895_s2 = inlined_call_operand.vmem [shape: f32[1,32], index: 2, kind: input, shape index: {}]   ;;  %s896_s3 = inlined_call_operand.vmem [shape: f32[1,32], index: 3, kind: input, shape index: {}]   ;;  %s897_s4 = inlined_call_operand.vmem [shape: f32[1,32], index: 4, kind: input, shape index: {}]   ;;  %s898_s5 = inlined_call_operand.hbm [shape: f32[16,32], index: 5, kind: output, shape index: {}]  }
   0x1   :  { %12 = vsyncpa [#allocation3 + $0x1], 0 }
   0x2   :  { %13 = vsyncpa [#allocation6], 0 }
   0x3   :  { %14 = vsyncpa [#allocation4], 0 }
   0x4   :  { %16 = vsyncpa [#allocation4 + $0x1], 0  ;;  %s740_s18 = smov 0   ;;  %s742_s19 = smov 0  }
   0x5   :  { %s744_s20 = smov 0   ;;  %s746_s21 = smov 0  }
   0x6 LB: > { %s174_s24 = sshll.u32 %s894_s1, 4  ;;  %s764_s25 = sadd.s32 4294967295, %s704_s21   ;;  %s704_s21 = sphi %s746_s21, %s908_s21   ;;  %s700_s20 = sphi %s744_s20, %s907_s20   ;;  %s696_s19 = sphi %s742_s19, %s906_s19   ;;  %s692_s18 = sphi %s740_s18, %s905_s18   ;;  %s175_s24 = int_to_ptr.hbm [resolvable:$true] %s174_s24 }
   0x7   : > { %p480_p0 = scmp.ge.s32.totalorder %s704_s21, 1  ;;  %p43_p1 = scmp.eq.s32.totalorder %s764_s25, 0 }
   0x8   : > { %p163_p2 = scmp.lt.s32.totalorder %s704_s21, 3  ;;  %s706_s27 = smov [#allocation5]  }
   0x9   : > { %s176_s28 = sshll.u32 %s706_s27, 4  ;;  %s707_s29 = smov 64   ;;  %s177_s28 = int_to_ptr.vmem [resolvable:$true] %s176_s28 }
   0xa   : > { %p769_p3 = pnand %p480_p0, %p163_p2  ;;  %s708_s30 = smov 4  }
   0xb   : > { %s479_s6 = sadd.s32 4294967294, %s704_s21   ;;  %s780_s7 = sadd.s32 1, %s704_s21  }
   0xc   : > { %p513_p4 = pneg %p769_p3  ;;  %s29_s8 = sadd.s32 1, %s700_s20 }
   0xd   : > { %s26_s9 = ssub.s32 %s704_s21, %s780_s7  ;;  %p36_p7 = scmp.ne.s32.totalorder %s700_s20, %s696_s19 }
   0xe   : > { %p514_p6 = pnand %p513_p4, %p43_p1  ;;  %p27_p8 = scmp.eq.s32.totalorder %s26_s9, 0 }
   0xf   : > { %p37_p9 = scmp.eq.s32.totalorder %s704_s21, 0  ;;  %p42_p10 = scmp.ne.s32.totalorder %s696_s19, %s692_s18 }
  0x10   : > { %516 = dma.hbm_to_vmem [thread:$0]  (!%p514_p6), %s175_s24, 256, %s177_s28, [#allocation6], %s707_s29, %s707_s29, %s708_s30  }
  0x11   : > { %p150_p11 = scmp.eq.s32.totalorder %s764_s25, 1  ;;  %p796_p12 = por %p43_p1, %p42_p10 }
  0x12   : > { %s792_s10 = scalar_select %p27_p8, %s700_s20, %s29_s8  }
  0x13   : > { %p800_p13 = por %p150_p11, %p36_p7  ;;  %p156_p0 = scmp.eq.s32.totalorder %s479_s6, 1 }
  0x14   : > { %p38_p2 = por %p37_p9, %p36_p7  ;;  %s199_s13 = sand.u32 1, %s700_s20  }
  0x15   : > { %p805_p4 = por %p156_p0, %p42_p10  ;;  %p526_p6 = scmp.lt.s32.totalorder %s704_s21, 2 }
  0x16   : > { %s483_s15 = sshll.u32 %s199_s13, 3  ;;  %s484_s16 = sshll.u32 %s704_s21, 3 }
  0x17   : > { %s207_s23 = scalar_lea.hbm %s893_s0, %s484_s16  ;;  %s203_s27 = scalar_lea.vmem [#allocation2], %s483_s15 }
  0x18   : > { %s209_s24 = sshll.u32 %s207_s23, 4  ;;  %s211_s28 = sshll.u32 %s203_s27, 4  ;;  %s210_s24 = int_to_ptr.hbm [resolvable:$true] %s209_s24  ;;  %s212_s28 = int_to_ptr.vmem [resolvable:$true] %s211_s28 }
  0x19   : > { %p814_p8 = pnand %p526_p6, %p38_p2  ;;  %s200_s30 = scalar_lea.sflag [#allocation3], %s199_s13 }
  0x1a   : > { %s604_s6 = sshra.s32 %s210_s24, 4  ;;  %s611_s15 = scalar_lea.hbm %s893_s0, 16  ;;  %s605_s6 = int_to_ptr.hbm [resolvable:$true] %s604_s6 }
  0x1b   : > { %s606_s8 = scalar_lea.hbm %s605_s6, 8  ;;  %p608_p9 = pneg %p814_p8 }
  0x1c   : > { %p607_p7 = scmp.ne.s32.totalorder %s605_s6, %s606_s8  ;;  %p612_p0 = scmp.lt.s32.totalorder %s605_s6, %s893_s0 }
  0x1d   : > { %p613_p2 = scmp.lt.s32.totalorder %s611_s15, %s606_s8 }
  0x1e   : > { %p609_p10 = pnand %p608_p9, %p607_p7 }
  0x1f   : > { %p614_p6 = por %p613_p2, %p612_p0 }
  0x20   : > { %p610_p11 = pneg %p609_p10 }
  0x22   : > { %p615_p5 = pnand %p614_p6, %p610_p11 }
  0x24   : > { %618 = shalt.err (!%p615_p5)
}
  0x25   : > { %520 = dma.hbm_to_vmem [thread:$0]  (!%p814_p8), %s210_s24, 128, %s212_s28, %s200_s30  }
  0x26   : > { %220 = sbr.rel (%p769_p3) target bundleno = 504 (0x1f8), region = 40  ;;  %s831_s13 = sand.u32 (!%p769_p3), 1, %s696_s19  }
  0x27   : > { %s486_s23 = sshll.u32 (!%p769_p3), %s831_s13, 3  ;;  %s223_s27 = scalar_lea.sflag (!%p769_p3), [#allocation3], %s831_s13 }
  0x28   : > { %s226_s6 = scalar_lea.vmem (!%p769_p3), [#allocation2], %s486_s23 }
  0x2b   : > { %679 = dma.done.wait (%p796_p12), %s223_s27, 128  }
  0x2c   : > { %681 = vsyncadd (%p796_p12), %s223_s27, 4294967168 }
  0x2d   : > { %683 = dma.done.wait (%p43_p1), [#allocation6], 256  }
  0x2e   : > { %685 = vsyncadd (%p43_p1), [#allocation6], 4294967040  ;;  %v504_v0 = vld [vmem:[#allocation5 + $0x8] sm:$0xff]  ;;  %v503_v1 = vld [vmem:[#allocation5] sm:$0xff]  ;;  %vm282_vm0 = vcmask 261120   ;;  %v709_v48 = vmov 32.0  }
  0x2f   : > { %292 = vmatpush.bf16.msra.mxu0 %v504_v0  ;;  %v260_v2 = vld [vmem:[%s226_s6] sm:$0xff]  ;;  %s500_s11 = sshll.u32 %s764_s25, 3  ;;  %s258_s25 = scalar_lea.vmem [#allocation7], %s486_s23 }
  0x30   : > { %v261_v3 = vpack.c.bf16 %v260_v2, %v260_v2  ;;  %v565_v4 = vld [vmem:[%s895_s2] ss:$0 sm:$0xff]  ;;  %s394_s9 = scalar_lea.hbm %s898_s5, %s500_s11  ;;  %s396_s17 = sshll.u32 %s258_s25, 4  ;;  %s397_s17 = int_to_ptr.vmem [resolvable:$true] %s396_s17 }
  0x31   : > { %s398_s22 = sshll.u32 %s394_s9, 4  ;;  %s384_s27 = scalar_lea.sflag [#allocation4], %s831_s13  ;;  %s399_s22 = int_to_ptr.hbm [resolvable:$true] %s398_s22 }
  0x32   : > { %s648_s6 = sshra.s32 %s399_s22, 4  ;;  %s654_s23 = scalar_lea.hbm %s898_s5, 16  ;;  %s649_s6 = int_to_ptr.hbm [resolvable:$true] %s648_s6 }
  0x33   : > { %293 = vmatpush.bf16.msra.mxu0 %v503_v1  ;;  %s650_s26 = scalar_lea.hbm %s649_s6, 8  ;;  %p655_p12 = scmp.lt.s32.totalorder %s649_s6, %s898_s5 }
  0x34   : > { %p651_p1 = scmp.ne.s32.totalorder %s649_s6, %s650_s26  ;;  %p656_p8 = scmp.lt.s32.totalorder %s654_s23, %s650_s26 }
  0x36   : > { %497 = vmatmul.msk.bf16.vlgmr.msra.gmra.mxu0 %vm282_vm0, %v261_v3  ;;  %p652_p3 = pnand %p651_p1, %p800_p13  ;;  %p657_p7 = por %p656_p8, %p655_p12 }
  0x38   : > { %p653_p5 = pneg %p652_p3 }
  0x3a   : > { %p658_p9 = pnand %p657_p7, %p653_p5 }
  0xb3   : > { %v295_v5 = vpop.f32.mrf.mxu0 }
  0xb4   : > { %v296_v6 = vadd.f32 %v565_v4, %v295_v5  ;;  %v566_v5 = vld [vmem:[%s896_s3] ss:$0 sm:$0xff] }
  0xb6   : > { %v300_v7 = vmul.f32 0.70710677, %v296_v6  ;;  %v299_v44 = vmul.f32 0.5, %v296_v6 }
  0xb8   : > { %v301_v8 = vmul.f32 %v300_v7, %v300_v7 }
  0xba   : > { %v302_v9 = vmin.f32 %v301_v8, 16.0  ;;  %v567_v8 = vld [vmem:[%s897_s4] ss:$0 sm:$0xff] }
  0xbb   : > { %v297_v10 = vpop.f32.mrf.mxu0 }
  0xbc   : > { %v303_v11 = vmul.f32 2.1237322e-06, %v302_v9  ;;  %v314_v12 = vmul.f32 3.8918573e-05, %v302_v9 }
  0xbe   : > { %v304_v13 = vadd.f32 0.00028619796, %v303_v11  ;;  %v315_v14 = vadd.f32 0.001143296, %v314_v12 }
  0xc0   : > { %v305_v15 = vmul.f32 %v304_v13, %v302_v9  ;;  %v316_v16 = vmul.f32 %v315_v14, %v302_v9 }
  0xc2   : > { %v317_v17 = vadd.f32 0.014752088, %v316_v16  ;;  %v306_v18 = vadd.f32 0.0036580483, %v305_v15 }
  0xc4   : > { %v318_v19 = vmul.f32 %v317_v17, %v302_v9  ;;  %v307_v21 = vmul.f32 %v306_v18, %v302_v9 }
  0xc6   : > { %v319_v20 = vadd.f32 0.112945676, %v318_v19  ;;  %v308_v24 = vadd.f32 0.05243302, %v307_v21 }
  0xc8   : > { %v320_v22 = vmul.f32 %v319_v20, %v302_v9  ;;  %v309_v27 = vmul.f32 %v308_v24, %v302_v9 }
  0xca   : > { %v321_v23 = vadd.f32 0.4994258, %v320_v22  ;;  %v310_v28 = vadd.f32 0.18741608, %v309_v27 }
  0xcc   : > { %v322_v25 = vmul.f32 %v321_v23, %v302_v9  ;;  %v311_v30 = vmul.f32 %v310_v28, %v302_v9 }
  0xce   : > { %v323_v26 = vadd.f32 1.0, %v322_v25  ;;  %v312_v34 = vadd.f32 1.1283791, %v311_v30 }
  0xd0   : > { %568 = vrcp.f32 %v323_v26  ;;  %v335_v33 = vand.u32 2147483648, %v323_v26  ;;  %v333_v36 = vand.u32 2147483647, %v323_v26  ;;  %vm329_vm2 = vweird.f32 %v323_v26 }
  0xd1   : > { %v313_v39 = vmul.f32 %v312_v34, %v300_v7  ;;  %570 = vrcp.f32 %v709_v48 }
  0xd2   : > { %v336_v38 = vor.u32 1.1754944e-38, %v335_v33  ;;  %vm334_vm4 = vcmp.eq.f32.partialorder %v333_v36, 8.507059e+37 }
  0xd6   : > { %v569_v29 = vpop.eup %568 }
  0xd7   : > { %v325_v31 = vmul.f32 %v569_v29, %v323_v26  ;;  %vm330_vm1 = vweird.f32 %v569_v29  ;;  %v571_v49 = vpop.eup %570 }
  0xd8   : > { %vm331_vm3 = vmor %vm329_vm2, %vm330_vm1  ;;  %v347_v50 = vmul.f32 32.0, %v571_v49  ;;  %vm351_vm5 = vweird.f32 %v571_v49 }
  0xd9   : > { %v326_v32 = vsub.f32 1.0, %v325_v31 }
  0xda   : > { %v348_v51 = vsub.f32 1.0, %v347_v50 }
  0xdb   : > { %v327_v35 = vmul.f32 %v569_v29, %v326_v32 }
  0xdc   : > { %v349_v52 = vmul.f32 %v571_v49, %v348_v51 }
  0xdd   : > { %v328_v37 = vadd.f32 %v569_v29, %v327_v35 }
  0xde   : > { %v350_v53 = vadd.f32 %v571_v49, %v349_v52 }
  0xdf   : > { %v332_v40 = vsel %vm331_vm3, %v569_v29, %v328_v37 }
  0xe0   : > { %v337_v41 = vsel %vm334_vm4, %v336_v38, %v332_v40  ;;  %v352_v54 = vsel %vm351_vm5, %v571_v49, %v350_v53 }
  0xe1   : > { %v338_v42 = vmul.f32 %v337_v41, %v313_v39 }
  0xe3   : > { %v498_v43 = vclamps-f32 %v338_v42, 1.0 }
  0xe5   : > { %v341_v45 = vadd.f32 1.0, %v498_v43 }
  0xe7   : > { %v342_v46 = vmul.f32 %v341_v45, %v299_v44 }
  0xe9   : > { %v343_v47 = vsel %vm282_vm0, %v342_v46, 0.0 }
  0xea   : > { %344 = vadd.xlane.f32.xlu0 %v343_v47 }
 0x15d   : > { %v345_v55 = vpop.xlane.xlu0 %344 }
 0x15e   : > { %v353_v56 = vmul.f32 %v352_v54, %v345_v55 }
 0x160   : > { %v354_v57 = vsub.f32 %v342_v46, %v353_v56 }
 0x162   : > { %v355_v58 = vmul.f32 %v354_v57, %v354_v57 }
 0x164   : > { %v356_v59 = vsel %vm282_vm0, %v355_v58, 0.0 }
 0x165   : > { %357 = vadd.xlane.f32.xlu0 %v356_v59 }
 0x1d8   : > { %v358_v60 = vpop.xlane.xlu0 %357 }
 0x1d9   : > { %v359_v61 = vmul.f32 %v358_v60, %v352_v54 }
 0x1db   : > { %v360_v62 = vadd.f32 1e-12, %v359_v61 }
 0x1dd   : > { %572 = vrsqrt.f32 %v360_v62  ;;  %vm367_vm7 = vweird.f32 %v360_v62 }
 0x1e3   : > { %v573_v63 = vpop.eup %572 }
 0x1e4   : > { %v362_v0 = vmul.f32 %v573_v63, %v360_v62  ;;  %vm368_vm6 = vweird.f32 %v573_v63 }
 0x1e5   : > { %vm369_vm8 = vmor %vm367_vm7, %vm368_vm6 }
 0x1e6   : > { %v363_v1 = vmul.f32 %v573_v63, %v362_v0 }
 0x1e8   : > { %v364_v2 = vmul.f32 0.5, %v363_v1 }
 0x1ea   : > { %v365_v3 = vsub.f32 1.5, %v364_v2 }
 0x1ec   : > { %v366_v4 = vmul.f32 %v573_v63, %v365_v3 }
 0x1ee   : > { %v370_v6 = vsel %vm369_vm8, %v573_v63, %v366_v4 }
 0x1ef   : > { %v371_v7 = vmul.f32 %v370_v6, %v354_v57 }
 0x1f1   : > { %v376_v9 = vmul.f32 %v566_v5, %v371_v7 }
 0x1f3   : > { %v381_v10 = vadd.f32 %v567_v8, %v376_v9 }
 0x1f5   : > { %382 = vst.msk [vmem:[%s258_s25] sm:$0xff] %vm282_vm0, %v381_v10 }
 0x1f6   : > { %661 = shalt.err (!%p658_p9)
}
 0x1f7   : > { %511 = dma.vmem_to_hbm [thread:$0]  (%p800_p13), %s397_s17, 128, %s399_s22, %s384_s27  }
 0x1f8 PF: > { %s410_s13 = sand.u32 1, %s692_s18   ;;  %p904_p10 = scmp.ge.s32.totalorder %s704_s21, 2 }
 0x1f9   : > { %s411_s30 = scalar_lea.sflag [#allocation4], %s410_s13 }
 0x1fa   : > { %p522_p11 = pnand %p904_p10, %p805_p4 }
 0x1fc   : > { %p523_p0 = pneg %p522_p11 }
 0x1fe   : > { %687 = dma.done.wait (%p523_p0), %s411_s30, 128  }
 0x1ff   : > { %689 = vsyncadd (%p523_p0), %s411_s30, 4294967168  ;;  %p19_p2 = scmp.ge.s32.totalorder %s780_s7, 4   ;;  %s905_s18 = smov %s696_s19 }
 0x200   : > { %s906_s19 = smov %s700_s20  ;;  %s907_s20 = smov %s792_s10 }
 0x201   : > { %s908_s21 = smov %s780_s7  ;;  %21 = sbr.rel (!%p19_p2) target bundleno = 6 (0x6), region = 89 }
 0x206   :  { %417 = vsyncpa [#allocation3], 1 }
 0x207   :  { %419 = vsyncpa [#allocation3 + $0x1], 1 }
 0x208   :  { %420 = vsyncpa [#allocation6], 1 }
 0x209   :  { %421 = vsyncpa [#allocation4], 1 }
 0x20a   :  { %423 = vsyncpa [#allocation4 + $0x1], 1 }

// kernel: tpu_custom_call.1
= control target key start
LH: loop header
LB: loop body
LE: loop exit
PB: predicated region body
PF: predicated region fallthrough
CT: control target
= control target key end

     0   :  { %10 = vsyncpa [#allocation3], 0  ;;  %s893_s0 = inlined_call_operand.hbm [shape: f32[16,32], index: 0, kind: input, shape index: {}]   ;;  %s894_s1 = inlined_call_operand.hbm [shape: bf16[32,32], index: 1, kind: input, shape index: {}]   ;;  %s895_s2 = inlined_call_operand.vmem [shape: f32[1,32], index: 2, kind: input, shape index: {}]   ;;  %s896_s3 = inlined_call_operand.vmem [shape: f32[1,32], index: 3, kind: input, shape index: {}]   ;;  %s897_s4 = inlined_call_operand.vmem [shape: f32[1,32], index: 4, kind: input, shape index: {}]   ;;  %s898_s5 = inlined_call_operand.hbm [shape: f32[16,32], index: 5, kind: output, shape index: {}]  }
   0x1   :  { %12 = vsyncpa [#allocation3 + $0x1], 0 }
   0x2   :  { %13 = vsyncpa [#allocation6], 0 }
   0x3   :  { %14 = vsyncpa [#allocation4], 0 }
   0x4   :  { %16 = vsyncpa [#allocation4 + $0x1], 0  ;;  %s740_s18 = smov 0   ;;  %s742_s19 = smov 0  }
   0x5   :  { %s744_s20 = smov 0   ;;  %s746_s21 = smov 0  }
   0x6 LB: > { %s174_s24 = sshll.u32 %s894_s1, 4  ;;  %s764_s25 = sadd.s32 4294967295, %s704_s21   ;;  %s704_s21 = sphi %s746_s21, %s908_s21   ;;  %s700_s20 = sphi %s744_s20, %s907_s20   ;;  %s696_s19 = sphi %s742_s19, %s906_s19   ;;  %s692_s18 = sphi %s740_s18, %s905_s18   ;;  %s175_s24 = int_to_ptr.hbm [resolvable:$true] %s174_s24 }
   0x7   : > { %p480_p0 = scmp.ge.s32.totalorder %s704_s21, 1  ;;  %p43_p1 = scmp.eq.s32.totalorder %s764_s25, 0 }
   0x8   : > { %p163_p2 = scmp.lt.s32.totalorder %s704_s21, 3  ;;  %s706_s27 = smov [#allocation5]  }
   0x9   : > { %s176_s28 = sshll.u32 %s706_s27, 4  ;;  %s707_s29 = smov 64   ;;  %s177_s28 = int_to_ptr.vmem [resolvable:$true] %s176_s28 }
   0xa   : > { %p769_p3 = pnand %p480_p0, %p163_p2  ;;  %s708_s30 = smov 4  }
   0xb   : > { %s479_s6 = sadd.s32 4294967294, %s704_s21   ;;  %s780_s7 = sadd.s32 1, %s704_s21  }
   0xc   : > { %p513_p4 = pneg %p769_p3  ;;  %s29_s8 = sadd.s32 1, %s700_s20 }
   0xd   : > { %s26_s9 = ssub.s32 %s704_s21, %s780_s7  ;;  %p36_p7 = scmp.ne.s32.totalorder %s700_s20, %s696_s19 }
   0xe   : > { %p514_p6 = pnand %p513_p4, %p43_p1  ;;  %p27_p8 = scmp.eq.s32.totalorder %s26_s9, 0 }
   0xf   : > { %p37_p9 = scmp.eq.s32.totalorder %s704_s21, 0  ;;  %p42_p10 = scmp.ne.s32.totalorder %s696_s19, %s692_s18 }
  0x10   : > { %516 = dma.hbm_to_vmem [thread:$0]  (!%p514_p6), %s175_s24, 256, %s177_s28, [#allocation6], %s707_s29, %s707_s29, %s708_s30  }
  0x11   : > { %p150_p11 = scmp.eq.s32.totalorder %s764_s25, 1  ;;  %p796_p12 = por %p43_p1, %p42_p10 }
  0x12   : > { %s792_s10 = scalar_select %p27_p8, %s700_s20, %s29_s8  }
  0x13   : > { %p800_p13 = por %p150_p11, %p36_p7  ;;  %p156_p0 = scmp.eq.s32.totalorder %s479_s6, 1 }
  0x14   : > { %p38_p2 = por %p37_p9, %p36_p7  ;;  %s199_s13 = sand.u32 1, %s700_s20  }
  0x15   : > { %p805_p4 = por %p156_p0, %p42_p10  ;;  %p526_p6 = scmp.lt.s32.totalorder %s704_s21, 2 }
  0x16   : > { %s483_s15 = sshll.u32 %s199_s13, 3  ;;  %s484_s16 = sshll.u32 %s704_s21, 3 }
  0x17   : > { %s207_s23 = scalar_lea.hbm %s893_s0, %s484_s16  ;;  %s203_s27 = scalar_lea.vmem [#allocation2], %s483_s15 }
  0x18   : > { %s209_s24 = sshll.u32 %s207_s23, 4  ;;  %s211_s28 = sshll.u32 %s203_s27, 4  ;;  %s210_s24 = int_to_ptr.hbm [resolvable:$true] %s209_s24  ;;  %s212_s28 = int_to_ptr.vmem [resolvable:$true] %s211_s28 }
  0x19   : > { %p814_p8 = pnand %p526_p6, %p38_p2  ;;  %s200_s30 = scalar_lea.sflag [#allocation3], %s199_s13 }
  0x1a   : > { %s604_s6 = sshra.s32 %s210_s24, 4  ;;  %s611_s15 = scalar_lea.hbm %s893_s0, 16  ;;  %s605_s6 = int_to_ptr.hbm [resolvable:$true] %s604_s6 }
  0x1b   : > { %s606_s8 = scalar_lea.hbm %s605_s6, 8  ;;  %p608_p9 = pneg %p814_p8 }
  0x1c   : > { %p607_p7 = scmp.ne.s32.totalorder %s605_s6, %s606_s8  ;;  %p612_p0 = scmp.lt.s32.totalorder %s605_s6, %s893_s0 }
  0x1d   : > { %p613_p2 = scmp.lt.s32.totalorder %s611_s15, %s606_s8 }
  0x1e   : > { %p609_p10 = pnand %p608_p9, %p607_p7 }
  0x1f   : > { %p614_p6 = por %p613_p2, %p612_p0 }
  0x20   : > { %p610_p11 = pneg %p609_p10 }
  0x22   : > { %p615_p5 = pnand %p614_p6, %p610_p11 }
  0x24   : > { %618 = shalt.err (!%p615_p5)
}
  0x25   : > { %520 = dma.hbm_to_vmem [thread:$0]  (!%p814_p8), %s210_s24, 128, %s212_s28, %s200_s30  }
  0x26   : > { %220 = sbr.rel (%p769_p3) target bundleno = 504 (0x1f8), region = 40  ;;  %s831_s13 = sand.u32 (!%p769_p3), 1, %s696_s19  }
  0x27   : > { %s486_s23 = sshll.u32 (!%p769_p3), %s831_s13, 3  ;;  %s223_s27 = scalar_lea.sflag (!%p769_p3), [#allocation3], %s831_s13 }
  0x28   : > { %s226_s6 = scalar_lea.vmem (!%p769_p3), [#allocation2], %s486_s23 }
  0x2b   : > { %679 = dma.done.wait (%p796_p12), %s223_s27, 128  }
  0x2c   : > { %681 = vsyncadd (%p796_p12), %s223_s27, 4294967168 }
  0x2d   : > { %683 = dma.done.wait (%p43_p1), [#allocation6], 256  }
  0x2e   : > { %685 = vsyncadd (%p43_p1), [#allocation6], 4294967040  ;;  %v504_v0 = vld [vmem:[#allocation5 + $0x8] sm:$0xff]  ;;  %v503_v1 = vld [vmem:[#allocation5] sm:$0xff]  ;;  %vm282_vm0 = vcmask 261120   ;;  %v709_v48 = vmov 32.0  }
  0x2f   : > { %292 = vmatpush.bf16.msra.mxu0 %v504_v0  ;;  %v260_v2 = vld [vmem:[%s226_s6] sm:$0xff]  ;;  %s500_s11 = sshll.u32 %s764_s25, 3  ;;  %s258_s25 = scalar_lea.vmem [#allocation7], %s486_s23 }
  0x30   : > { %v261_v3 = vpack.c.bf16 %v260_v2, %v260_v2  ;;  %v565_v4 = vld [vmem:[%s895_s2] ss:$0 sm:$0xff]  ;;  %s394_s9 = scalar_lea.hbm %s898_s5, %s500_s11  ;;  %s396_s17 = sshll.u32 %s258_s25, 4  ;;  %s397_s17 = int_to_ptr.vmem [resolvable:$true] %s396_s17 }
  0x31   : > { %s398_s22 = sshll.u32 %s394_s9, 4  ;;  %s384_s27 = scalar_lea.sflag [#allocation4], %s831_s13  ;;  %s399_s22 = int_to_ptr.hbm [resolvable:$true] %s398_s22 }
  0x32   : > { %s648_s6 = sshra.s32 %s399_s22, 4  ;;  %s654_s23 = scalar_lea.hbm %s898_s5, 16  ;;  %s649_s6 = int_to_ptr.hbm [resolvable:$true] %s648_s6 }
  0x33   : > { %293 = vmatpush.bf16.msra.mxu0 %v503_v1  ;;  %s650_s26 = scalar_lea.hbm %s649_s6, 8  ;;  %p655_p12 = scmp.lt.s32.totalorder %s649_s6, %s898_s5 }
  0x34   : > { %p651_p1 = scmp.ne.s32.totalorder %s649_s6, %s650_s26  ;;  %p656_p8 = scmp.lt.s32.totalorder %s654_s23, %s650_s26 }
  0x36   : > { %497 = vmatmul.msk.bf16.vlgmr.msra.gmra.mxu0 %vm282_vm0, %v261_v3  ;;  %p652_p3 = pnand %p651_p1, %p800_p13  ;;  %p657_p7 = por %p656_p8, %p655_p12 }
  0x38   : > { %p653_p5 = pneg %p652_p3 }
  0x3a   : > { %p658_p9 = pnand %p657_p7, %p653_p5 }
  0xb3   : > { %v295_v5 = vpop.f32.mrf.mxu0 }
  0xb4   : > { %v296_v6 = vadd.f32 %v565_v4, %v295_v5  ;;  %v566_v5 = vld [vmem:[%s896_s3] ss:$0 sm:$0xff] }
  0xb6   : > { %v300_v7 = vmul.f32 0.70710677, %v296_v6  ;;  %v299_v44 = vmul.f32 0.5, %v296_v6 }
  0xb8   : > { %v301_v8 = vmul.f32 %v300_v7, %v300_v7 }
  0xba   : > { %v302_v9 = vmin.f32 %v301_v8, 16.0  ;;  %v567_v8 = vld [vmem:[%s897_s4] ss:$0 sm:$0xff] }
  0xbb   : > { %v297_v10 = vpop.f32.mrf.mxu0 }
  0xbc   : > { %v303_v11 = vmul.f32 2.1237322e-06, %v302_v9  ;;  %v314_v12 = vmul.f32 3.8918573e-05, %v302_v9 }
  0xbe   : > { %v304_v13 = vadd.f32 0.00028619796, %v303_v11  ;;  %v315_v14 = vadd.f32 0.001143296, %v314_v12 }
  0xc0   : > { %v305_v15 = vmul.f32 %v304_v13, %v302_v9  ;;  %v316_v16 = vmul.f32 %v315_v14, %v302_v9 }
  0xc2   : > { %v317_v17 = vadd.f32 0.014752088, %v316_v16  ;;  %v306_v18 = vadd.f32 0.0036580483, %v305_v15 }
  0xc4   : > { %v318_v19 = vmul.f32 %v317_v17, %v302_v9  ;;  %v307_v21 = vmul.f32 %v306_v18, %v302_v9 }
  0xc6   : > { %v319_v20 = vadd.f32 0.112945676, %v318_v19  ;;  %v308_v24 = vadd.f32 0.05243302, %v307_v21 }
  0xc8   : > { %v320_v22 = vmul.f32 %v319_v20, %v302_v9  ;;  %v309_v27 = vmul.f32 %v308_v24, %v302_v9 }
  0xca   : > { %v321_v23 = vadd.f32 0.4994258, %v320_v22  ;;  %v310_v28 = vadd.f32 0.18741608, %v309_v27 }
  0xcc   : > { %v322_v25 = vmul.f32 %v321_v23, %v302_v9  ;;  %v311_v30 = vmul.f32 %v310_v28, %v302_v9 }
  0xce   : > { %v323_v26 = vadd.f32 1.0, %v322_v25  ;;  %v312_v34 = vadd.f32 1.1283791, %v311_v30 }
  0xd0   : > { %568 = vrcp.f32 %v323_v26  ;;  %v335_v33 = vand.u32 2147483648, %v323_v26  ;;  %v333_v36 = vand.u32 2147483647, %v323_v26  ;;  %vm329_vm2 = vweird.f32 %v323_v26 }
  0xd1   : > { %v313_v39 = vmul.f32 %v312_v34, %v300_v7  ;;  %570 = vrcp.f32 %v709_v48 }
  0xd2   : > { %v336_v38 = vor.u32 1.1754944e-38, %v335_v33  ;;  %vm334_vm4 = vcmp.eq.f32.partialorder %v333_v36, 8.507059e+37 }
  0xd6   : > { %v569_v29 = vpop.eup %568 }
  0xd7   : > { %v325_v31 = vmul.f32 %v569_v29, %v323_v26  ;;  %vm330_vm1 = vweird.f32 %v569_v29  ;;  %v571_v49 = vpop.eup %570 }
  0xd8   : > { %vm331_vm3 = vmor %vm329_vm2, %vm330_vm1  ;;  %v347_v50 = vmul.f32 32.0, %v571_v49  ;;  %vm351_vm5 = vweird.f32 %v571_v49 }
  0xd9   : > { %v326_v32 = vsub.f32 1.0, %v325_v31 }
  0xda   : > { %v348_v51 = vsub.f32 1.0, %v347_v50 }
  0xdb   : > { %v327_v35 = vmul.f32 %v569_v29, %v326_v32 }
  0xdc   : > { %v349_v52 = vmul.f32 %v571_v49, %v348_v51 }
  0xdd   : > { %v328_v37 = vadd.f32 %v569_v29, %v327_v35 }
  0xde   : > { %v350_v53 = vadd.f32 %v571_v49, %v349_v52 }
  0xdf   : > { %v332_v40 = vsel %vm331_vm3, %v569_v29, %v328_v37 }
  0xe0   : > { %v337_v41 = vsel %vm334_vm4, %v336_v38, %v332_v40  ;;  %v352_v54 = vsel %vm351_vm5, %v571_v49, %v350_v53 }
  0xe1   : > { %v338_v42 = vmul.f32 %v337_v41, %v313_v39 }
  0xe3   : > { %v498_v43 = vclamps-f32 %v338_v42, 1.0 }
  0xe5   : > { %v341_v45 = vadd.f32 1.0, %v498_v43 }
  0xe7   : > { %v342_v46 = vmul.f32 %v341_v45, %v299_v44 }
  0xe9   : > { %v343_v47 = vsel %vm282_vm0, %v342_v46, 0.0 }
  0xea   : > { %344 = vadd.xlane.f32.xlu0 %v343_v47 }
 0x15d   : > { %v345_v55 = vpop.xlane.xlu0 %344 }
 0x15e   : > { %v353_v56 = vmul.f32 %v352_v54, %v345_v55 }
 0x160   : > { %v354_v57 = vsub.f32 %v342_v46, %v353_v56 }
 0x162   : > { %v355_v58 = vmul.f32 %v354_v57, %v354_v57 }
 0x164   : > { %v356_v59 = vsel %vm282_vm0, %v355_v58, 0.0 }
 0x165   : > { %357 = vadd.xlane.f32.xlu0 %v356_v59 }
 0x1d8   : > { %v358_v60 = vpop.xlane.xlu0 %357 }
 0x1d9   : > { %v359_v61 = vmul.f32 %v358_v60, %v352_v54 }
 0x1db   : > { %v360_v62 = vadd.f32 1e-12, %v359_v61 }
 0x1dd   : > { %572 = vrsqrt.f32 %v360_v62  ;;  %vm367_vm7 = vweird.f32 %v360_v62 }
 0x1e3   : > { %v573_v63 = vpop.eup %572 }
 0x1e4   : > { %v362_v0 = vmul.f32 %v573_v63, %v360_v62  ;;  %vm368_vm6 = vweird.f32 %v573_v63 }
 0x1e5   : > { %vm369_vm8 = vmor %vm367_vm7, %vm368_vm6 }
 0x1e6   : > { %v363_v1 = vmul.f32 %v573_v63, %v362_v0 }
 0x1e8   : > { %v364_v2 = vmul.f32 0.5, %v363_v1 }
 0x1ea   : > { %v365_v3 = vsub.f32 1.5, %v364_v2 }
 0x1ec   : > { %v366_v4 = vmul.f32 %v573_v63, %v365_v3 }
 0x1ee   : > { %v370_v6 = vsel %vm369_vm8, %v573_v63, %v366_v4 }
 0x1ef   : > { %v371_v7 = vmul.f32 %v370_v6, %v354_v57 }
 0x1f1   : > { %v376_v9 = vmul.f32 %v566_v5, %v371_v7 }
 0x1f3   : > { %v381_v10 = vadd.f32 %v567_v8, %v376_v9 }
 0x1f5   : > { %382 = vst.msk [vmem:[%s258_s25] sm:$0xff] %vm282_vm0, %v381_v10 }
 0x1f6   : > { %661 = shalt.err (!%p658_p9)
}
 0x1f7   : > { %511 = dma.vmem_to_hbm [thread:$0]  (%p800_p13), %s397_s17, 128, %s399_s22, %s384_s27  }
 0x1f8 PF: > { %s410_s13 = sand.u32 1, %s692_s18   ;;  %p904_p10 = scmp.ge.s32.totalorder %s704_s21, 2 }
 0x1f9   : > { %s411_s30 = scalar_lea.sflag [#allocation4], %s410_s13 }
 0x1fa   : > { %p522_p11 = pnand %p904_p10, %p805_p4 }
 0x1fc   : > { %p523_p0 = pneg %p522_p11 }
 0x1fe   : > { %687 = dma.done.wait (%p523_p0), %s411_s30, 128  }
 0x1ff   : > { %689 = vsyncadd (%p523_p0), %s411_s30, 4294967168  ;;  %p19_p2 = scmp.ge.s32.totalorder %s780_s7, 4   ;;  %s905_s18 = smov %s696_s19 }
 0x200   : > { %s906_s19 = smov %s700_s20  ;;  %s907_s20 = smov %s792_s10 }
 0x201   : > { %s908_s21 = smov %s780_s7  ;;  %21 = sbr.rel (!%p19_p2) target bundleno = 6 (0x6), region = 89 }
 0x206   :  { %417 = vsyncpa [#allocation3], 1 }
 0x207   :  { %419 = vsyncpa [#allocation3 + $0x1], 1 }
 0x208   :  { %420 = vsyncpa [#allocation6], 1 }
 0x209   :  { %421 = vsyncpa [#allocation4], 1 }
 0x20a   :  { %423 = vsyncpa [#allocation4 + $0x1], 1 }

</bundles_post_ra>
